<compile_context>
chip_gen: v6e
topology: v6e:2x2x1
jax: 0.10.0
libtpu: 0.0.40
codegen_flags: <defaults>
</compile_context>

<pallas_src>
import jax
import jax.numpy as jnp
from jax.experimental import pallas as pl
from jax.experimental.pallas import tpu as pltpu

OUTPUT_SIZE = 2


def _rnn_head_kernel(x_ref, h0_ref, w_all_ref, head_ref, out_ref):
    """One grid step == one batch chunk, full sequence processed in-kernel.

    x_ref    : (T, bb, I)      input sequence, time-major for shuffle-free xw[t] slices
    h0_ref   : (bb, H)         initial hidden state
    w_all_ref: (I+H+1, H)      [W_ih ; W_hh ; (b_ih+b_hh)] packed row-wise
    head_ref : (H+1, OUT)      [W_d ; b_d] packed row-wise
    out_ref  : (bb, H+OUT)     [final hidden | logits] fused output
    """
    T, bb, I = x_ref.shape
    H = h0_ref.shape[1]

    # Static slices of the packed constant operands (one DMA stream instead of five).
    w_ih = w_all_ref[0:I, :]                    # (I, H)
    w_hh = w_all_ref[I:I + H, :]                # (H, H)
    bias = w_all_ref[I + H:I + H + 1, :]        # (1, H)  == b_ih + b_hh

    # Hoisted input projection, bias folded in ONCE (off the serial chain).
    # (T, bb, I) -> (T*bb, I) is a leading-dim merge; last dim untouched.
    x = x_ref[...].astype(jnp.float32)
    xw = jnp.dot(x.reshape(T * bb, I), w_ih,
                 preferred_element_type=jnp.float32)          # (T*bb, H)
    xw = (xw + bias).reshape(T, bb, H)                        # (T, bb, H)

    # Serial recurrence: statically unrolled (T small & known at trace time).
    # Per-step critical path is now just: h @ W_hh -> add xw[t] -> tanh.
    h = h0_ref[...].astype(jnp.float32)                       # (bb, H)
    for t in range(T):
        h = jnp.tanh(xw[t] + jnp.dot(h, w_hh,
                                     preferred_element_type=jnp.float32))

    # Fused epilogue: Linear head on the final hidden state, single output store.
    w_d = head_ref[0:H, :]                                    # (H, OUT)
    b_d = head_ref[H:H + 1, :]                                # (1, OUT)
    logits = jnp.dot(h, w_d, preferred_element_type=jnp.float32) + b_d
    out_ref[...] = jnp.concatenate([h, logits], axis=-1).astype(out_ref.dtype)


def cell_module_forward(x, params, hx=None, *, batch_block=None):
    """x: (B, T, I) float32.  Returns (logits (B, OUT), hx (B, H), None)."""
    B, T, I = x.shape
    H = params["w_hh"].shape[0]
    OUT = params["w_d"].shape[1]

    if hx is None:
        h0 = jnp.zeros((B, H), jnp.float32)
    else:
        hx = jnp.asarray(hx)
        if hx.ndim == 3:           # torch nn.RNN convention (num_layers, B, H)
            assert hx.shape[0] == 1 and hx.shape[1:] == (B, H), "bad hx shape"
            hx = hx[0]
        assert hx.shape == (B, H), "hx must be (B, H) or (1, B, H)"
        h0 = hx.astype(jnp.float32)

    # Batch-chunk grid axis ("parallel") — only worth it on 2-TC v7x with a large batch.
    # Chunks smaller than B must be sublane-aligned (multiple of 8) and >= 2 of them.
    if batch_block is None or batch_block >= B or B < 16:
        bb = B
    else:
        bb = batch_block
        assert B % bb == 0 and bb % 8 == 0, "batch_block must divide B and be 8-aligned"
        assert bb <= 16, "cap batch_block to avoid vreg spills of the resident xw"
    nb = B // bb

    # Pack the small constant operands: [W_ih ; W_hh ; bias] and [W_d ; b_d].
    bias_row = (params["b_ih"] + params["b_hh"]).reshape(1, H).astype(jnp.float32)
    w_all = jnp.concatenate(
        [params["w_ih"].astype(jnp.float32),
         params["w_hh"].astype(jnp.float32),
         bias_row], axis=0)                                   # (I+H+1, H)
    head = jnp.concatenate(
        [params["w_d"].astype(jnp.float32),
         params["b_d"].reshape(1, OUT).astype(jnp.float32)], axis=0)   # (H+1, OUT)

    # Time-major input so xw[t] is a leading-axis slice inside the kernel
    # (one-time wrapper transpose, off the kernel critical path).
    x_tm = jnp.transpose(x.astype(jnp.float32), (1, 0, 2))    # (T, B, I)

    fused = pl.pallas_call(
        _rnn_head_kernel,
        out_shape=jax.ShapeDtypeStruct((B, H + OUT), jnp.float32),
        grid_spec=pltpu.PrefetchScalarGridSpec(
            num_scalar_prefetch=0,
            grid=(nb,),
            in_specs=[
                pl.BlockSpec((T, bb, I), lambda i: (0, i, 0)),      # x (full sequence)
                pl.BlockSpec((bb, H), lambda i: (i, 0)),            # h0
                pl.BlockSpec((I + H + 1, H), lambda i: (0, 0)),     # packed RNN weights
                pl.BlockSpec((H + 1, OUT), lambda i: (0, 0)),       # packed head
            ],
            out_specs=pl.BlockSpec((bb, H + OUT), lambda i: (i, 0)),
        ),
        compiler_params=pltpu.CompilerParams(
            dimension_semantics=("parallel",)),   # independent batch chunks (v7x 2-TC)
    )(x_tm, h0, w_all, head)

    hx_out = fused[:, :H]
    logits = fused[:, H:]
    return logits, hx_out, None


def init_params(key, input_size, hidden_size, output_size):
    """Deterministic init mimicking PyTorch defaults: U(-1/sqrt(H), 1/sqrt(H))."""
    ks = jax.random.split(key, 6)
    k_rnn = 1.0 / jnp.sqrt(hidden_size)
    k_lin = 1.0 / jnp.sqrt(hidden_size)
    return {
        # stored already transposed: x @ w_ih, h @ w_hh
        "w_ih": jax.random.uniform(ks[0], (input_size, hidden_size),
                                   jnp.float32, -k_rnn, k_rnn),
        "w_hh": jax.random.uniform(ks[1], (hidden_size, hidden_size),
                                   jnp.float32, -k_rnn, k_rnn),
        "b_ih": jax.random.uniform(ks[2], (hidden_size,), jnp.float32, -k_rnn, k_rnn),
        "b_hh": jax.random.uniform(ks[3], (hidden_size,), jnp.float32, -k_rnn, k_rnn),
        "w_d": jax.random.uniform(ks[4], (hidden_size, output_size),
                                  jnp.float32, -k_lin, k_lin),
        "b_d": jax.random.uniform(ks[5], (output_size,), jnp.float32, -k_lin, k_lin),
    }


def _reference_forward(x, params):
    """Pure-JAX reference for correctness checking."""
    B, T, I = x.shape
    H = params["w_hh"].shape[0]
    h = jnp.zeros((B, H), jnp.float32)
    bias = params["b_ih"] + params["b_hh"]
    for t in range(T):
        h = jnp.tanh(x[:, t, :] @ params["w_ih"] + h @ params["w_hh"] + bias)
    logits = h @ params["w_d"] + params["b_d"]
    return logits, h


if __name__ == "__main__":
    B, T, I, H = 4, 8, 4, 32      # batch, seq, input_size, FLAGS['rnn_cells']

    key = jax.random.PRNGKey(0)
    k_x, k_p = jax.random.split(key)
    x = jax.random.normal(k_x, (B, T, I), jnp.float32)
    params = init_params(k_p, I, H, OUTPUT_SIZE)

    logits, hx_out, updated_state = cell_module_forward(x, params, hx=None)
    logits = jax.block_until_ready(logits)
    hx_out = jax.block_until_ready(hx_out)

    ref_logits, ref_h = _reference_forward(x, params)
    assert logits.shape == (B, OUTPUT_SIZE)
    assert hx_out.shape == (B, H)
    assert jnp.allclose(logits, ref_logits, atol=1e-5, rtol=1e-5)
    assert jnp.allclose(hx_out, ref_h, atol=1e-5, rtol=1e-5)

    print("KERNEL_OK")
</pallas_src>

<mosaic_0001>
module attributes {stable_mosaic.version = 11 : i64} {
  func.func @_rnn_head_kernel(%arg0: i32, %arg1: memref<8x4x4xf32, #tpu.memory_space<vmem>>, %arg2: memref<4x32xf32, #tpu.memory_space<vmem>>, %arg3: memref<37x32xf32, #tpu.memory_space<vmem>>, %arg4: memref<33x2xf32, #tpu.memory_space<vmem>>, %arg5: memref<4x34xf32, #tpu.memory_space<vmem>>) attributes {dimension_semantics = [#tpu.dimension_semantics<parallel>], iteration_bounds = array<i64: 1>, scalar_prefetch = 0 : i64, scratch_operands = 0 : i64, tpu.core_type = #tpu.core_type<tc>, window_params = [{transform_indices = @transform_0, window_bounds = array<i64: 8, 4, 4>}, {transform_indices = @transform_1, window_bounds = array<i64: 4, 32>}, {pipeline_mode = #tpu.pipeline_mode<synchronous>, transform_indices = @transform_2, window_bounds = array<i64: 37, 32>}, {pipeline_mode = #tpu.pipeline_mode<synchronous>, transform_indices = @transform_3, window_bounds = array<i64: 33, 2>}, {transform_indices = @transform_4, window_bounds = array<i64: 4, 34>}]} {
    %c0 = arith.constant 0 : index
    %c0_0 = arith.constant 0 : index
    %0 = vector.load %arg3[%c0, %c0_0] : memref<37x32xf32, #tpu.memory_space<vmem>>, vector<4x32xf32>
    %c4 = arith.constant 4 : index
    %c0_1 = arith.constant 0 : index
    %1 = vector.load %arg3[%c4, %c0_1] : memref<37x32xf32, #tpu.memory_space<vmem>>, vector<32x32xf32>
    %c36 = arith.constant 36 : index
    %c0_2 = arith.constant 0 : index
    %2 = vector.load %arg3[%c36, %c0_2] : memref<37x32xf32, #tpu.memory_space<vmem>>, vector<1x32xf32>
    %c0_3 = arith.constant 0 : index
    %c0_4 = arith.constant 0 : index
    %c0_5 = arith.constant 0 : index
    %3 = vector.load %arg1[%c0_3, %c0_4, %c0_5] : memref<8x4x4xf32, #tpu.memory_space<vmem>>, vector<8x4x4xf32>
    %4 = vector.shape_cast %3 : vector<8x4x4xf32> to vector<32x4xf32>
    %cst = arith.constant dense<0.000000e+00> : vector<32x32xf32>
    %5 = tpu.matmul %4, %0, %cst {dimension_numbers = #tpu.dot_dimension_numbers<[1], [0], [0], [1], [0, 0, 1, 1], [], []>} : vector<32x4xf32>, vector<4x32xf32>, vector<32x32xf32> -> vector<32x32xf32>
    %6 = vector.broadcast %2 : vector<1x32xf32> to vector<32x32xf32>
    %7 = arith.addf %5, %6 : vector<32x32xf32>
    %8 = vector.shape_cast %7 : vector<32x32xf32> to vector<8x4x32xf32>
    %c0_6 = arith.constant 0 : index
    %c0_7 = arith.constant 0 : index
    %9 = vector.load %arg2[%c0_6, %c0_7] : memref<4x32xf32, #tpu.memory_space<vmem>>, vector<4x32xf32>
    %10 = vector.extract_strided_slice %8 {offsets = [0, 0, 0], sizes = [1, 4, 32], strides = [1, 1, 1]} : vector<8x4x32xf32> to vector<1x4x32xf32>
    %11 = vector.shape_cast %10 : vector<1x4x32xf32> to vector<4x32xf32>
    %cst_8 = arith.constant dense<0.000000e+00> : vector<4x32xf32>
    %12 = tpu.matmul %9, %1, %cst_8 {dimension_numbers = #tpu.dot_dimension_numbers<[1], [0], [0], [1], [0, 0, 1, 1], [], []>} : vector<4x32xf32>, vector<32x32xf32>, vector<4x32xf32> -> vector<4x32xf32>
    %13 = arith.addf %11, %12 : vector<4x32xf32>
    %14 = math.tanh %13 : vector<4x32xf32>
    %15 = vector.extract_strided_slice %8 {offsets = [1, 0, 0], sizes = [1, 4, 32], strides = [1, 1, 1]} : vector<8x4x32xf32> to vector<1x4x32xf32>
    %16 = vector.shape_cast %15 : vector<1x4x32xf32> to vector<4x32xf32>
    %cst_9 = arith.constant dense<0.000000e+00> : vector<4x32xf32>
    %17 = tpu.matmul %14, %1, %cst_9 {dimension_numbers = #tpu.dot_dimension_numbers<[1], [0], [0], [1], [0, 0, 1, 1], [], []>} : vector<4x32xf32>, vector<32x32xf32>, vector<4x32xf32> -> vector<4x32xf32>
    %18 = arith.addf %16, %17 : vector<4x32xf32>
    %19 = math.tanh %18 : vector<4x32xf32>
    %20 = vector.extract_strided_slice %8 {offsets = [2, 0, 0], sizes = [1, 4, 32], strides = [1, 1, 1]} : vector<8x4x32xf32> to vector<1x4x32xf32>
    %21 = vector.shape_cast %20 : vector<1x4x32xf32> to vector<4x32xf32>
    %cst_10 = arith.constant dense<0.000000e+00> : vector<4x32xf32>
    %22 = tpu.matmul %19, %1, %cst_10 {dimension_numbers = #tpu.dot_dimension_numbers<[1], [0], [0], [1], [0, 0, 1, 1], [], []>} : vector<4x32xf32>, vector<32x32xf32>, vector<4x32xf32> -> vector<4x32xf32>
    %23 = arith.addf %21, %22 : vector<4x32xf32>
    %24 = math.tanh %23 : vector<4x32xf32>
    %25 = vector.extract_strided_slice %8 {offsets = [3, 0, 0], sizes = [1, 4, 32], strides = [1, 1, 1]} : vector<8x4x32xf32> to vector<1x4x32xf32>
    %26 = vector.shape_cast %25 : vector<1x4x32xf32> to vector<4x32xf32>
    %cst_11 = arith.constant dense<0.000000e+00> : vector<4x32xf32>
    %27 = tpu.matmul %24, %1, %cst_11 {dimension_numbers = #tpu.dot_dimension_numbers<[1], [0], [0], [1], [0, 0, 1, 1], [], []>} : vector<4x32xf32>, vector<32x32xf32>, vector<4x32xf32> -> vector<4x32xf32>
    %28 = arith.addf %26, %27 : vector<4x32xf32>
    %29 = math.tanh %28 : vector<4x32xf32>
    %30 = vector.extract_strided_slice %8 {offsets = [4, 0, 0], sizes = [1, 4, 32], strides = [1, 1, 1]} : vector<8x4x32xf32> to vector<1x4x32xf32>
    %31 = vector.shape_cast %30 : vector<1x4x32xf32> to vector<4x32xf32>
    %cst_12 = arith.constant dense<0.000000e+00> : vector<4x32xf32>
    %32 = tpu.matmul %29, %1, %cst_12 {dimension_numbers = #tpu.dot_dimension_numbers<[1], [0], [0], [1], [0, 0, 1, 1], [], []>} : vector<4x32xf32>, vector<32x32xf32>, vector<4x32xf32> -> vector<4x32xf32>
    %33 = arith.addf %31, %32 : vector<4x32xf32>
    %34 = math.tanh %33 : vector<4x32xf32>
    %35 = vector.extract_strided_slice %8 {offsets = [5, 0, 0], sizes = [1, 4, 32], strides = [1, 1, 1]} : vector<8x4x32xf32> to vector<1x4x32xf32>
    %36 = vector.shape_cast %35 : vector<1x4x32xf32> to vector<4x32xf32>
    %cst_13 = arith.constant dense<0.000000e+00> : vector<4x32xf32>
    %37 = tpu.matmul %34, %1, %cst_13 {dimension_numbers = #tpu.dot_dimension_numbers<[1], [0], [0], [1], [0, 0, 1, 1], [], []>} : vector<4x32xf32>, vector<32x32xf32>, vector<4x32xf32> -> vector<4x32xf32>
    %38 = arith.addf %36, %37 : vector<4x32xf32>
    %39 = math.tanh %38 : vector<4x32xf32>
    %40 = vector.extract_strided_slice %8 {offsets = [6, 0, 0], sizes = [1, 4, 32], strides = [1, 1, 1]} : vector<8x4x32xf32> to vector<1x4x32xf32>
    %41 = vector.shape_cast %40 : vector<1x4x32xf32> to vector<4x32xf32>
    %cst_14 = arith.constant dense<0.000000e+00> : vector<4x32xf32>
    %42 = tpu.matmul %39, %1, %cst_14 {dimension_numbers = #tpu.dot_dimension_numbers<[1], [0], [0], [1], [0, 0, 1, 1], [], []>} : vector<4x32xf32>, vector<32x32xf32>, vector<4x32xf32> -> vector<4x32xf32>
    %43 = arith.addf %41, %42 : vector<4x32xf32>
    %44 = math.tanh %43 : vector<4x32xf32>
    %45 = vector.extract_strided_slice %8 {offsets = [7, 0, 0], sizes = [1, 4, 32], strides = [1, 1, 1]} : vector<8x4x32xf32> to vector<1x4x32xf32>
    %46 = vector.shape_cast %45 : vector<1x4x32xf32> to vector<4x32xf32>
    %cst_15 = arith.constant dense<0.000000e+00> : vector<4x32xf32>
    %47 = tpu.matmul %44, %1, %cst_15 {dimension_numbers = #tpu.dot_dimension_numbers<[1], [0], [0], [1], [0, 0, 1, 1], [], []>} : vector<4x32xf32>, vector<32x32xf32>, vector<4x32xf32> -> vector<4x32xf32>
    %48 = arith.addf %46, %47 : vector<4x32xf32>
    %49 = math.tanh %48 : vector<4x32xf32>
    %c0_16 = arith.constant 0 : index
    %c0_17 = arith.constant 0 : index
    %50 = vector.load %arg4[%c0_16, %c0_17] : memref<33x2xf32, #tpu.memory_space<vmem>>, vector<32x2xf32>
    %c32 = arith.constant 32 : index
    %c0_18 = arith.constant 0 : index
    %51 = vector.load %arg4[%c32, %c0_18] : memref<33x2xf32, #tpu.memory_space<vmem>>, vector<1x2xf32>
    %cst_19 = arith.constant dense<0.000000e+00> : vector<4x2xf32>
    %52 = tpu.matmul %49, %50, %cst_19 {dimension_numbers = #tpu.dot_dimension_numbers<[1], [0], [0], [1], [0, 0, 1, 1], [], []>} : vector<4x32xf32>, vector<32x2xf32>, vector<4x2xf32> -> vector<4x2xf32>
    %53 = vector.broadcast %51 : vector<1x2xf32> to vector<4x2xf32>
    %54 = arith.addf %52, %53 : vector<4x2xf32>
    %55 = tpu.concatenate %49, %54 in 1 : vector<4x32xf32>, vector<4x2xf32> -> vector<4x34xf32>
    %c0_20 = arith.constant 0 : index
    %c0_21 = arith.constant 0 : index
    %56 = vector.load %arg5[%c0_20, %c0_21] : memref<4x34xf32, #tpu.memory_space<vmem>>, vector<4x34xf32>
    tpu.vector_store %arg5[%c0_20, %c0_21], %55 {strides = array<i32>} : memref<4x34xf32, #tpu.memory_space<vmem>>, vector<4x34xf32>,
    return
  }
  func.func @transform_0(%arg0: i32) -> (i32, i32, i32) {
    %c0_i32 = arith.constant 0 : i32
    %c0_i32_0 = arith.constant 0 : i32
    %c0_i32_1 = arith.constant 0 : i32
    return %c0_i32, %arg0, %c0_i32_0 : i32, i32, i32
  }
  func.func @transform_1(%arg0: i32) -> (i32, i32) {
    %c0_i32 = arith.constant 0 : i32
    %c0_i32_0 = arith.constant 0 : i32
    return %arg0, %c0_i32 : i32, i32
  }
  func.func @transform_2(%arg0: i32) -> (i32, i32) {
    %c0_i32 = arith.constant 0 : i32
    %c0_i32_0 = arith.constant 0 : i32
    %c0_i32_1 = arith.constant 0 : i32
    return %c0_i32, %c0_i32_0 : i32, i32
  }
  func.func @transform_3(%arg0: i32) -> (i32, i32) {
    %c0_i32 = arith.constant 0 : i32
    %c0_i32_0 = arith.constant 0 : i32
    %c0_i32_1 = arith.constant 0 : i32
    return %c0_i32, %c0_i32_0 : i32, i32
  }
  func.func @transform_4(%arg0: i32) -> (i32, i32) {
    %c0_i32 = arith.constant 0 : i32
    %c0_i32_0 = arith.constant 0 : i32
    return %arg0, %c0_i32 : i32, i32
  }
}

</mosaic_0001>

<bundles_post_ra>
// kernel: tpu_custom_call.1
= control target key start
LH: loop header
LB: loop body
LE: loop exit
PB: predicated region body
PF: predicated region fallthrough
CT: control target
= control target key end

     0   :  { %vm57_vm0 = vcmask 1043456   ;;  %v1082_v3 = vmov 0.0   ;;  %vm48_vm1 = vcmask 31744   ;;  %vm1083_vm2 = vmmov 0   ;;  %s1279_s0 = inlined_call_operand.vmem [shape: f32[8,4,4], index: 0, kind: input, shape index: {}]   ;;  %s1280_s1 = inlined_call_operand.vmem [shape: f32[4,32], index: 1, kind: input, shape index: {}]   ;;  %s1281_s2 = inlined_call_operand.vmem [shape: f32[37,32], index: 2, kind: input, shape index: {}]   ;;  %s1282_s3 = inlined_call_operand.vmem [shape: f32[33,2], index: 3, kind: input, shape index: {}]   ;;  %s1283_s4 = inlined_call_operand.hbm [shape: f32[4,34], index: 4, kind: output, shape index: {}]  }
   0x1   :  { %v18_v0 = vld [vmem:[%s1281_s2] sm:$0xf]  ;;  %937 = vmatprep.subr.mxu1 %v1082_v3  ;;  %v1041_v4 = vld [vmem:[%s1279_s0 + $0x8] sm:$0xff]   ;;  %v1130_v5 = vld [vmem:[%s1281_s2 + $0x14] sm:$0xff]  ;;  %945 = vmatprep.mubr.msk.f32.mxu1 %vm1083_vm2, %v1082_v3 }
   0x2   :  { %v1117_v1 = vld [vmem:[%s1281_s2 + $0x1c] sm:$0xff]  ;;  %929 = vmatprep.subr.msk.mxu0 %vm57_vm0, %v18_v0  ;;  %v1137_v6 = vld [vmem:[%s1281_s2 + $0xc] sm:$0xff]  ;;  %v1145_v7 = vld [vmem:[%s1281_s2 + $0x4] sm:$0xff] }
   0x3   :  { %v1040_v2 = vld [vmem:[%s1279_s0] sm:$0xff]   ;;  %938 = vmatpush3.msra.mxu1 %v1117_v1  ;;  %930 = vmatpush3.msk.msra.mxu0 %vm57_vm0, %v18_v0 }
   0x4   :  { %931 = vmatprep.mubr.msk.f32.mxu0 %vm48_vm1, %v1040_v2  ;;  %939 = vmatprep.subr.mxu1 %v1082_v3 }
   0x5   :  { %932 = vmatmul.mubr.msk.f32.vlgmr.msra.gmra.mxu0 %vm48_vm1, %v1041_v4  ;;  %940 = vmatpush3.msra.mxu1 %v1130_v5 }
   0x6   :  { %941 = vmatprep.subr.mxu1 %v1082_v3 }
   0x7   :  { %9 = vsyncpa [#allocation3], 0  ;;  %942 = vmatpush3.msra.mxu1 %v1137_v6  ;;  %v158_v8 = vld [vmem:[%s1280_s1] sm:$0xf]  ;;  %vm159_vm3 = vcmask 261120   ;;  %948 = vmatprep.subr.mxu0 %v1082_v3  ;;  %v1042_v9 = vld [vmem:[%s1279_s0 + $0x10] sm:$0xff]  }
   0x8   :  { %943 = vmatprep.subr.mxu1 %v1082_v3  ;;  %949 = vmatpush3.msra.mxu0 %v1117_v1  ;;  %v1043_v10 = vld [vmem:[%s1279_s0 + $0x18] sm:$0xff]   ;;  %v1189_v12 = vld [vmem:[%s1281_s2 + $0x24] ss:$0 sm:$0xff]  ;;  %v762_v52 = vld [vmem:[%s1282_s3 + $0x10] sm:$0xff]  ;;  %s1084_s18 = smov 32   ;;  %s1085_s19 = smov [#allocation2]  }
   0x9   :  { %944 = vmatpush3.msra.mxu1 %v1145_v7  ;;  %950 = vmatprep.subr.mxu0 %v1082_v3  ;;  %v763_v51 = vld [vmem:[%s1282_s3 + $0x18] sm:$0xff]  ;;  %v761_v53 = vld [vmem:[%s1282_s3 + $0x8] sm:$0xff]  ;;  %v760_v54 = vld [vmem:[%s1282_s3] sm:$0xff]  ;;  %s855_s20 = sshll.u32 %s1085_s19, 4  ;;  %vm847_vm4 = vcmask 273408   ;;  %s856_s20 = int_to_ptr.vmem [resolvable:$true] %s855_s20 }
   0xa   :  { %946 = vmatmul.mubr.msk.f32.vlgmr.msra.gmra.mxu1 %vm159_vm3, %v158_v8  ;;  %951 = vmatpush3.msra.mxu0 %v1130_v5  ;;  %v877_v60 = vld [vmem:[%s1282_s3 + $0x20] ss:$0 sm:$0xff]  ;;  %s1060_s21 = scalar_lea.vmem %s856_s20, 64  ;;  %p1065_p1 = scmp.lt.s32.totalorder %s856_s20, %s856_s20 }
   0xb   :  { %952 = vmatprep.subr.mxu0 %v1082_v3  ;;  %959 = vmatprep.subr.mxu1 %v1082_v3  ;;  %p1061_p0 = scmp.ne.s32.totalorder %s856_s20, %s1060_s21  ;;  %p1066_p2 = scmp.lt.s32.totalorder %s1060_s21, %s1060_s21 }
   0xc   :  { %953 = vmatpush3.msra.mxu0 %v1137_v6  ;;  %960 = vmatpush3.msra.mxu1 %v1117_v1 }
   0xd   :  { %954 = vmatprep.subr.mxu0 %v1082_v3  ;;  %961 = vmatprep.subr.mxu1 %v1082_v3  ;;  %p1067_p3 = por %p1066_p2, %p1065_p1 }
   0xe   :  { %955 = vmatpush3.msra.mxu0 %v1145_v7  ;;  %962 = vmatpush3.msra.mxu1 %v1130_v5 }
   0xf   :  { %963 = vmatprep.subr.mxu1 %v1082_v3  ;;  %967 = vmatprep.mubr.msk.f32.mxu1 %vm1083_vm2, %v1082_v3  ;;  %p1068_p4 = pnand %p1067_p3, %p1061_p0 }
  0x10   :  { %964 = vmatpush3.msra.mxu1 %v1137_v6  ;;  %970 = vmatprep.subr.mxu0 %v1082_v3 }
  0x11   :  { %965 = vmatprep.subr.mxu1 %v1082_v3  ;;  %934 = vmatprep.mubr.msk.f32.mxu0 %vm48_vm1, %v1042_v9 }
  0x12   :  { %966 = vmatpush3.msra.mxu1 %v1145_v7  ;;  %935 = vmatmul.mubr.msk.f32.gmra.mxu0 %vm48_vm1, %v1043_v10 }
  0x13   :  { %981 = vmatprep.subr.mxu1 %v1082_v3  ;;  %956 = vmatprep.mubr.msk.f32.mxu0 %vm1083_vm2, %v1082_v3 }
  0xc5   :  { %v933_v11 = vpop.f32.mrf.mxu0 }
  0xc6   :  { %v133_v26 = vadd.f32 %v933_v11, %v1189_v12 }
  0xc7   :  { %v127_v13 = vpop.f32.mrf.mxu0 }
  0xc8   :  { %v128_v14 = vadd.f32 %v1189_v12, %v127_v13  ;;  %v151_v31 = vcombine.high %v133_v26, %v133_v26 }
  0xca   :  { %v229_v15 = vpop.f32.mrf.mxu1  ;;  %v150_v21 = vcombine.high %v128_v14, %v128_v14 }
  0xcb   :  { %v233_v16 = vadd.f32 %v229_v15, %v128_v14 }
  0xcc   :  { %v947_v17 = vpop.f32.mrf.mxu1 }
  0xcd   :  { %1044 = vtanh.f32 %v233_v16 }
  0xd2   :  { %v1203_v19 = vpop.f32.mrf.mxu0 }
  0xd3   :  { %v143_v46 = vadd.f32 %v1203_v19, %v1189_v12 }
  0xd4   :  { %v137_v20 = vpop.f32.mrf.mxu0 }
  0xd5   :  { %v138_v36 = vadd.f32 %v1189_v12, %v137_v20  ;;  %v153_v55 = vcombine.high %v143_v46, %v143_v46 }
  0xd7   :  { %v152_v41 = vcombine.high %v138_v36, %v138_v36 }
  0xda   :  { %v1045_v18 = vpop.eup %1044 }
  0xdb   :  { %957 = vmatmul.mubr.msk.f32.vlgmr.msra.gmra.mxu0 %vm159_vm3, %v1045_v18 }
  0xdc   :  { %971 = vmatpush3.msra.mxu0 %v1117_v1  ;;  %978 = vmatprep.mubr.msk.f32.mxu0 %vm1083_vm2, %v1082_v3 }
  0xdd   :  { %972 = vmatprep.subr.mxu0 %v1082_v3 }
  0xde   :  { %973 = vmatpush3.msra.mxu0 %v1130_v5 }
  0xdf   :  { %974 = vmatprep.subr.mxu0 %v1082_v3 }
  0xe0   :  { %975 = vmatpush3.msra.mxu0 %v1137_v6 }
  0xe1   :  { %976 = vmatprep.subr.mxu0 %v1082_v3 }
  0xe2   :  { %977 = vmatpush3.msra.mxu0 %v1145_v7 }
  0xe3   :  { %992 = vmatprep.subr.mxu0 %v1082_v3 }
 0x19b   :  { %v304_v22 = vpop.f32.mrf.mxu0 }
 0x19c   :  { %v308_v23 = vadd.f32 %v304_v22, %v150_v21 }
 0x19d   :  { %v958_v24 = vpop.f32.mrf.mxu0 }
 0x19e   :  { %1046 = vtanh.f32 %v308_v23 }
 0x1ab   :  { %v1047_v25 = vpop.eup %1046 }
 0x1ac   :  { %968 = vmatmul.mubr.msk.f32.vlgmr.msra.gmra.mxu1 %vm159_vm3, %v1047_v25 }
 0x1ad   :  { %982 = vmatpush3.msra.mxu1 %v1117_v1  ;;  %989 = vmatprep.mubr.msk.f32.mxu1 %vm1083_vm2, %v1082_v3 }
 0x1ae   :  { %983 = vmatprep.subr.mxu1 %v1082_v3 }
 0x1af   :  { %984 = vmatpush3.msra.mxu1 %v1130_v5 }
 0x1b0   :  { %985 = vmatprep.subr.mxu1 %v1082_v3 }
 0x1b1   :  { %986 = vmatpush3.msra.mxu1 %v1137_v6 }
 0x1b2   :  { %987 = vmatprep.subr.mxu1 %v1082_v3 }
 0x1b3   :  { %988 = vmatpush3.msra.mxu1 %v1145_v7 }
 0x1b4   :  { %1003 = vmatprep.subr.mxu1 %v1082_v3 }
 0x26c   :  { %v379_v27 = vpop.f32.mrf.mxu1 }
 0x26d   :  { %v383_v28 = vadd.f32 %v379_v27, %v133_v26 }
 0x26e   :  { %v969_v29 = vpop.f32.mrf.mxu1 }
 0x26f   :  { %1048 = vtanh.f32 %v383_v28 }
 0x27c   :  { %v1049_v30 = vpop.eup %1048 }
 0x27d   :  { %979 = vmatmul.mubr.msk.f32.vlgmr.msra.gmra.mxu0 %vm159_vm3, %v1049_v30 }
 0x27e   :  { %993 = vmatpush3.msra.mxu0 %v1117_v1  ;;  %1000 = vmatprep.mubr.msk.f32.mxu0 %vm1083_vm2, %v1082_v3 }
 0x27f   :  { %994 = vmatprep.subr.mxu0 %v1082_v3 }
 0x280   :  { %995 = vmatpush3.msra.mxu0 %v1130_v5 }
 0x281   :  { %996 = vmatprep.subr.mxu0 %v1082_v3 }
 0x282   :  { %997 = vmatpush3.msra.mxu0 %v1137_v6 }
 0x283   :  { %998 = vmatprep.subr.mxu0 %v1082_v3 }
 0x284   :  { %999 = vmatpush3.msra.mxu0 %v1145_v7 }
 0x285   :  { %1014 = vmatprep.subr.mxu0 %v1082_v3 }
 0x33d   :  { %v454_v32 = vpop.f32.mrf.mxu0 }
 0x33e   :  { %v458_v33 = vadd.f32 %v454_v32, %v151_v31 }
 0x33f   :  { %v980_v34 = vpop.f32.mrf.mxu0 }
 0x340   :  { %1050 = vtanh.f32 %v458_v33 }
 0x34d   :  { %v1051_v35 = vpop.eup %1050 }
 0x34e   :  { %990 = vmatmul.mubr.msk.f32.vlgmr.msra.gmra.mxu1 %vm159_vm3, %v1051_v35 }
 0x34f   :  { %1004 = vmatpush3.msra.mxu1 %v1117_v1  ;;  %1011 = vmatprep.mubr.msk.f32.mxu1 %vm1083_vm2, %v1082_v3 }
 0x350   :  { %1005 = vmatprep.subr.mxu1 %v1082_v3 }
 0x351   :  { %1006 = vmatpush3.msra.mxu1 %v1130_v5 }
 0x352   :  { %1007 = vmatprep.subr.mxu1 %v1082_v3 }
 0x353   :  { %1008 = vmatpush3.msra.mxu1 %v1137_v6 }
 0x354   :  { %1009 = vmatprep.subr.mxu1 %v1082_v3 }
 0x355   :  { %1010 = vmatpush3.msra.mxu1 %v1145_v7 }
 0x356   :  { %1025 = vmatprep.subr.mxu1 %v1082_v3 }
 0x40e   :  { %v529_v37 = vpop.f32.mrf.mxu1 }
 0x40f   :  { %v533_v38 = vadd.f32 %v529_v37, %v138_v36 }
 0x410   :  { %v991_v39 = vpop.f32.mrf.mxu1 }
 0x411   :  { %1052 = vtanh.f32 %v533_v38 }
 0x41e   :  { %v1053_v40 = vpop.eup %1052 }
 0x41f   :  { %1001 = vmatmul.mubr.msk.f32.vlgmr.msra.gmra.mxu0 %vm159_vm3, %v1053_v40 }
 0x420   :  { %1015 = vmatpush3.msra.mxu0 %v1117_v1  ;;  %1022 = vmatprep.mubr.msk.f32.mxu0 %vm1083_vm2, %v1082_v3 }
 0x421   :  { %1016 = vmatprep.subr.mxu0 %v1082_v3 }
 0x422   :  { %1017 = vmatpush3.msra.mxu0 %v1130_v5 }
 0x423   :  { %1018 = vmatprep.subr.mxu0 %v1082_v3 }
 0x424   :  { %1019 = vmatpush3.msra.mxu0 %v1137_v6 }
 0x425   :  { %1020 = vmatprep.subr.mxu0 %v1082_v3 }
 0x426   :  { %1021 = vmatpush3.msra.mxu0 %v1145_v7 }
 0x4df   :  { %v604_v42 = vpop.f32.mrf.mxu0 }
 0x4e0   :  { %v608_v43 = vadd.f32 %v604_v42, %v152_v41 }
 0x4e1   :  { %v1002_v44 = vpop.f32.mrf.mxu0 }
 0x4e2   :  { %1054 = vtanh.f32 %v608_v43 }
 0x4ef   :  { %v1055_v45 = vpop.eup %1054 }
 0x4f0   :  { %1012 = vmatmul.mubr.msk.f32.vlgmr.msra.gmra.mxu1 %vm159_vm3, %v1055_v45 }
 0x4f1   :  { %1033 = vmatprep.mubr.msk.f32.mxu1 %vm1083_vm2, %v1082_v3  ;;  %1026 = vmatpush3.msra.mxu1 %v763_v51 }
 0x4f2   :  { %1027 = vmatprep.subr.mxu1 %v1082_v3 }
 0x4f3   :  { %1028 = vmatpush3.msra.mxu1 %v762_v52 }
 0x4f4   :  { %1029 = vmatprep.subr.mxu1 %v1082_v3 }
 0x4f5   :  { %1030 = vmatpush3.msra.mxu1 %v761_v53 }
 0x4f6   :  { %1031 = vmatprep.subr.mxu1 %v1082_v3 }
 0x4f7   :  { %1032 = vmatpush3.msra.mxu1 %v760_v54 }
 0x5b0   :  { %v679_v47 = vpop.f32.mrf.mxu1 }
 0x5b1   :  { %v683_v48 = vadd.f32 %v679_v47, %v143_v46 }
 0x5b2   :  { %v1013_v49 = vpop.f32.mrf.mxu1 }
 0x5b3   :  { %1056 = vtanh.f32 %v683_v48 }
 0x5c0   :  { %v1057_v50 = vpop.eup %1056 }
 0x5c1   :  { %1023 = vmatmul.mubr.msk.f32.vlgmr.msra.gmra.mxu0 %vm159_vm3, %v1057_v50 }
 0x681   :  { %v754_v56 = vpop.f32.mrf.mxu0 }
 0x682   :  { %v758_v57 = vadd.f32 %v754_v56, %v153_v55 }
 0x683   :  { %v1024_v58 = vpop.f32.mrf.mxu0 }
 0x684   :  { %1058 = vtanh.f32 %v758_v57 }
 0x691   :  { %v1059_v59 = vpop.eup %1058 }
 0x692   :  { %1034 = vmatmul.mubr.msk.f32.vlgmr.msra.gmra.mxu1 %vm159_vm3, %v1059_v59 }
 0x752   :  { %v838_v61 = vpop.f32.mrf.mxu1 }
 0x753   :  { %v839_v62 = vadd.f32 %v877_v60, %v838_v61 }
 0x754   :  { %v1035_v63 = vpop.f32.mrf.mxu1 }
 0x755   :  { %843 = vrot.lane.b32.xlu0 %v839_v62, %s1084_s18 }
 0x7c7   :  { %v844_v0 = vpop.permute.xlu0 %843 }
 0x7c8   :  { %v846_v1 = vsel %vm159_vm3, %v1059_v59, %v844_v0 }
 0x7c9   :  { %848 = vst.msk [vmem:[#allocation2] sm:$0xf] %vm847_vm4, %v846_v1 }
 0x7ca   :  { %1071 = shalt.err (!%p1068_p4)
}
 0x7cb   :  { %858 = dma.vmem_to_hbm [thread:$0]  %s856_s20, 64, %s1283_s4, [#allocation3]  }
 0x7cc   :  { %1080 = dma.done.wait [#allocation3], 64  }
 0x7cd   :  { %1081 = vsyncadd [#allocation3], 4294967232 }
 0x7ce   :  { %862 = vsyncpa [#allocation3], 1 }

</bundles_post_ra>
